<compile_context>
chip_gen: v7x
topology: tpu7x:2x2x1
jax: 0.10.0
libtpu: 0.0.40
codegen_flags: <defaults>
</compile_context>

<pallas_src>
import jax
import jax.numpy as jnp
from jax.experimental import pallas as pl
from jax.experimental.pallas import tpu as pltpu


_BLOCK_BYTES = 2 * 1024 * 1024    # per x/out block budget (safe on v5e/v6e/v7x)
_VMEM_LIMIT = 32 * 1024 * 1024    # explicit scoped-VMEM limit (above v5e's 16 MiB default)


# ----------------------------------------------------------------------------- kernels

def _ls_kernel_3d(x_ref, g_ref, o_ref):
    # x_ref: (n_tile, c_tile, lane_tile) in x.dtype
    # g_ref: (c_tile, 1) float32 — per-channel scale, broadcast over N and lanes
    x = x_ref[...].astype(jnp.float32)
    g = g_ref[...][None, :, :]
    o_ref[...] = (x * g).astype(o_ref.dtype)


def _ls_kernel_2d(x_ref, g_ref, o_ref):
    # x_ref: (n_tile, lane_tile) in x.dtype
    # g_ref: (1, lane_tile) float32 — per-lane scale (gamma repeated over H*W)
    o_ref[...] = (x_ref[...].astype(jnp.float32) * g_ref[...]).astype(o_ref.dtype)


# ----------------------------------------------------------------------------- tile selection

def _select_tiles_3d(N, C, HW, itemsize, budget=_BLOCK_BYTES):
    """Tiles for the (N, C, HW) layout.  Last two dims obey the (8,128) rule."""
    # Lanes: prefer full extent (lane-dense, no narrow trailing grid column).
    if 8 * HW * itemsize <= budget:
        lane_tile = HW
    else:
        lane_tile = max(128, ((budget // (8 * itemsize)) // 128) * 128)
        if lane_tile >= HW:
            lane_tile = HW

    # Channels: multiple of 8 or full extent.
    rows_budget = max(8, budget // (lane_tile * itemsize))
    if C <= rows_budget:
        c_tile = C
    else:
        c_tile = (rows_budget // 8) * 8

    # Batch: leading dim is unconstrained; pack more N per block if it fits.
    block_bytes = c_tile * lane_tile * itemsize
    if c_tile == C and lane_tile == HW and block_bytes <= budget:
        n_tile = min(N, max(1, budget // max(1, block_bytes)))
    else:
        n_tile = 1
    return n_tile, c_tile, lane_tile


def _select_tiles_2d(N, L, itemsize, budget=_BLOCK_BYTES):
    """Tiles for the (N, L=C*HW) layout.  N is second-to-last dim: mult of 8 or full."""
    if 8 * L * itemsize <= budget:
        lane_tile = L
    else:
        lane_tile = max(128, ((budget // (8 * itemsize)) // 128) * 128)
        if lane_tile >= L:
            lane_tile = L

    rows_budget = max(8, budget // (lane_tile * itemsize))
    if N <= rows_budget:
        n_tile = N
    else:
        n_tile = (rows_budget // 8) * 8
    return n_tile, lane_tile


# ----------------------------------------------------------------------------- wrapper

def layer_scale_2d(x, gamma):
    """x: (N, C, H, W); gamma: (C,).  Returns x * gamma[None, :, None, None]."""
    N, C, H, W = x.shape
    HW = H * W
    itemsize = jnp.dtype(x.dtype).itemsize
    gamma_f32 = gamma.astype(jnp.float32)

    if HW < 128:
        # Late EFv2 stages (e.g. 7x7 = 49 lanes): fold channels into the lane
        # axis so output stores are wide/unmasked.  Gamma becomes one small
        # (1, C*HW) fp32 row shared by all N rows.
        L = C * HW
        x2 = x.reshape(N, L)
        g_row = jnp.repeat(gamma_f32, HW).reshape(1, L)
        n_tile, lane_tile = _select_tiles_2d(N, L, itemsize)
        grid = (pl.cdiv(N, n_tile), pl.cdiv(L, lane_tile))
        cost = pl.CostEstimate(
            flops=N * L,
            transcendentals=0,
            bytes_accessed=2 * N * L * itemsize + L * 4,
        )
        out = pl.pallas_call(
            _ls_kernel_2d,
            out_shape=jax.ShapeDtypeStruct((N, L), x.dtype),
            grid_spec=pltpu.PrefetchScalarGridSpec(
                num_scalar_prefetch=0,
                grid=grid,
                in_specs=[
                    pl.BlockSpec((n_tile, lane_tile), lambda n, l: (n, l)),
                    pl.BlockSpec((1, lane_tile), lambda n, l: (0, l)),
                ],
                out_specs=pl.BlockSpec((n_tile, lane_tile), lambda n, l: (n, l)),
            ),
            compiler_params=pltpu.CompilerParams(
                dimension_semantics=("parallel", "parallel"),
                vmem_limit_bytes=_VMEM_LIMIT,
            ),
            cost_estimate=cost,
        )(x2, g_row)
        return out.reshape(N, C, H, W)

    # General path: (N, C, HW) with full-extent lanes whenever they fit the
    # block budget (EFv2 at 224^2: every call is a single full-extent block).
    x3 = x.reshape(N, C, HW)
    g2 = gamma_f32.reshape(C, 1)
    n_tile, c_tile, lane_tile = _select_tiles_3d(N, C, HW, itemsize)
    grid = (pl.cdiv(N, n_tile), pl.cdiv(C, c_tile), pl.cdiv(HW, lane_tile))
    cost = pl.CostEstimate(
        flops=N * C * HW,
        transcendentals=0,
        bytes_accessed=2 * N * C * HW * itemsize + C * 4,
    )
    out = pl.pallas_call(
        _ls_kernel_3d,
        out_shape=jax.ShapeDtypeStruct((N, C, HW), x.dtype),
        grid_spec=pltpu.PrefetchScalarGridSpec(
            num_scalar_prefetch=0,
            grid=grid,
            in_specs=[
                pl.BlockSpec((n_tile, c_tile, lane_tile), lambda n, c, l: (n, c, l)),
                pl.BlockSpec((c_tile, 1), lambda n, c, l: (c, 0)),
            ],
            out_specs=pl.BlockSpec((n_tile, c_tile, lane_tile), lambda n, c, l: (n, c, l)),
        ),
        compiler_params=pltpu.CompilerParams(
            dimension_semantics=("parallel", "parallel", "parallel"),
            vmem_limit_bytes=_VMEM_LIMIT,
        ),
        cost_estimate=cost,
    )(x3, g2)
    return out.reshape(N, C, H, W)


class LayerScale2d:
    """JAX/Pallas port of timm's LayerScale2d (forward: x * gamma.view(1,-1,1,1))."""

    def __init__(self, dim, init_values=1e-5):
        # deterministic init, mirrors: init_values * torch.ones(dim)
        self.gamma = init_values * jnp.ones((dim,), dtype=jnp.float32)

    def __call__(self, x):
        return layer_scale_2d(x, self.gamma)


if __name__ == "__main__":
    key = jax.random.PRNGKey(0)

    # 1) Small shape consistent with the module (NCHW) — general (N,C,HW) path.
    N, C, H, W = 2, 4, 16, 16
    x = jax.random.normal(key, (N, C, H, W), dtype=jnp.float32)
    module = LayerScale2d(dim=C, init_values=1e-5)
    y = jax.block_until_ready(module(x))
    ref = x * module.gamma.reshape(1, C, 1, 1)
    assert y.shape == x.shape
    assert jnp.allclose(y, ref, atol=1e-6, rtol=1e-6)

    # 2) Realistic EfficientFormerV2 stage (HW=3136): single full-extent block,
    #    lane-dense stores, no trailing sub-128 grid column.
    x2 = jax.random.normal(jax.random.PRNGKey(0), (1, 48, 56, 56), dtype=jnp.float32)
    m2 = LayerScale2d(dim=48, init_values=1e-5)
    y2 = jax.block_until_ready(m2(x2))
    ref2 = x2 * m2.gamma.reshape(1, 48, 1, 1)
    assert jnp.allclose(y2, ref2, atol=1e-6, rtol=1e-6)

    # 3) Late-stage shape with H*W < 128 (7x7=49): (N, C*HW) lane-dense path.
    x3 = jax.random.normal(jax.random.PRNGKey(1), (2, 176, 7, 7), dtype=jnp.float32)
    m3 = LayerScale2d(dim=176, init_values=1e-5)
    y3 = jax.block_until_ready(m3(x3))
    ref3 = x3 * m3.gamma.reshape(1, 176, 1, 1)
    assert jnp.allclose(y3, ref3, atol=1e-6, rtol=1e-6)

    # 4) bf16 activations: gamma stays fp32, multiply in fp32, cast at store —
    #    matches the PyTorch fp32-Parameter * bf16-activation reference.
    xb = x.astype(jnp.bfloat16)
    yb = jax.block_until_ready(module(xb))
    refb = (xb.astype(jnp.float32) * module.gamma.reshape(1, C, 1, 1)).astype(jnp.bfloat16)
    assert jnp.allclose(yb.astype(jnp.float32), refb.astype(jnp.float32),
                        atol=1e-3, rtol=1e-2)

    print("KERNEL_OK")
</pallas_src>

<mosaic_0001>
module attributes {stable_mosaic.version = 11 : i64} {
  func.func @_ls_kernel_3d(%arg0: i32, %arg1: i32, %arg2: i32, %arg3: memref<2x4x256xf32, #tpu.memory_space<vmem>>, %arg4: memref<4x1xf32, #tpu.memory_space<vmem>>, %arg5: memref<2x4x256xf32, #tpu.memory_space<vmem>>) attributes {dimension_semantics = [#tpu.dimension_semantics<parallel>, #tpu.dimension_semantics<parallel>, #tpu.dimension_semantics<parallel>], iteration_bounds = array<i64: 1, 1, 1>, scalar_prefetch = 0 : i64, scratch_operands = 0 : i64, tpu.core_type = #tpu.core_type<tc>, window_params = [{transform_indices = @transform_0, window_bounds = array<i64: 2, 4, 256>}, {transform_indices = @transform_1, window_bounds = array<i64: 4, 1>}, {transform_indices = @transform_2, window_bounds = array<i64: 2, 4, 256>}]} {
    %c0 = arith.constant 0 : index
    %c0_0 = arith.constant 0 : index
    %c0_1 = arith.constant 0 : index
    %0 = vector.load %arg3[%c0, %c0_0, %c0_1] : memref<2x4x256xf32, #tpu.memory_space<vmem>>, vector<2x4x256xf32>
    %c0_2 = arith.constant 0 : index
    %c0_3 = arith.constant 0 : index
    %1 = vector.load %arg4[%c0_2, %c0_3] : memref<4x1xf32, #tpu.memory_space<vmem>>, vector<4x1xf32>
    %2 = vector.shape_cast %1 : vector<4x1xf32> to vector<1x4x1xf32>
    %3 = vector.broadcast %2 : vector<1x4x1xf32> to vector<2x4x256xf32>
    %4 = arith.mulf %0, %3 : vector<2x4x256xf32>
    %c0_4 = arith.constant 0 : index
    %c0_5 = arith.constant 0 : index
    %c0_6 = arith.constant 0 : index
    %5 = vector.load %arg5[%c0_4, %c0_5, %c0_6] : memref<2x4x256xf32, #tpu.memory_space<vmem>>, vector<2x4x256xf32>
    tpu.vector_store %arg5[%c0_4, %c0_5, %c0_6], %4 {strides = array<i32>} : memref<2x4x256xf32, #tpu.memory_space<vmem>>, vector<2x4x256xf32>,
    return
  }
  func.func @transform_0(%arg0: i32, %arg1: i32, %arg2: i32) -> (i32, i32, i32) {
    %c0_i32 = arith.constant 0 : i32
    return %arg0, %arg1, %arg2 : i32, i32, i32
  }
  func.func @transform_1(%arg0: i32, %arg1: i32, %arg2: i32) -> (i32, i32) {
    %c0_i32 = arith.constant 0 : i32
    %c0_i32_0 = arith.constant 0 : i32
    return %arg1, %c0_i32 : i32, i32
  }
  func.func @transform_2(%arg0: i32, %arg1: i32, %arg2: i32) -> (i32, i32, i32) {
    %c0_i32 = arith.constant 0 : i32
    return %arg0, %arg1, %arg2 : i32, i32, i32
  }
}

</mosaic_0001>

<bundles_post_ra>
// kernel: tpu_custom_call.1
= control target key start
LH: loop header
LB: loop body
LE: loop exit
PB: predicated region body
PF: predicated region fallthrough
CT: control target
= control target key end

     0   :  { %7 = vsyncpa [#allocation3], 0  ;;  %s171_s0 = inlined_call_operand.hbm [shape: f32[2,4,256], index: 0, kind: input, shape index: {}]   ;;  %s172_s1 = inlined_call_operand.vmem [shape: f32[4,1], index: 1, kind: input, shape index: {}]   ;;  %s173_s2 = inlined_call_operand.hbm [shape: f32[2,4,256], index: 2, kind: output, shape index: {}]  }
   0x1   :  { %8 = vsyncpa [#allocation4], 0  ;;  %s117_s9 = smov [#allocation2]   ;;  %s69_s13 = scalar_lea.hbm %s171_s0, 256 }
   0x2   :  { %s14_s10 = sshll.u32 %s117_s9, 4  ;;  %p70_p0 = scmp.ne.s32.totalorder %s171_s0, %s69_s13  ;;  %s15_s10 = int_to_ptr.vmem [resolvable:$true] %s14_s10 }
   0x3   :  { %p73_p1 = scmp.lt.u32.totalorder %s69_s13, %s171_s0 }
   0x5   :  { %p75_p2 = pnand %p73_p1, %p70_p0 }
   0x7   :  { %78 = shalt.err (!%p75_p2)
}
   0x8   :  { %s79_s18 = scalar_lea.vmem %s15_s10, 256  ;;  %p84_p4 = scmp.lt.s32.totalorder %s15_s10, %s15_s10 }
   0x9   :  { %p80_p3 = scmp.ne.s32.totalorder %s15_s10, %s79_s18  ;;  %p85_p5 = scmp.lt.s32.totalorder %s79_s18, %s79_s18 }
   0xb   :  { %p86_p6 = por %p85_p5, %p84_p4 }
   0xd   :  { %p87_p7 = pnand %p86_p6, %p80_p3 }
   0xf   :  { %90 = shalt.err (!%p87_p7)
}
  0x10   :  { %s118_s19 = smov 128   ;;  %s119_s20 = smov 8  }
  0x11   :  { %20 = dma.hbm_to_vmem [thread:$0]  %s171_s0, 256, %s15_s10, [#allocation3], %s118_s19, %s118_s19, %s119_s20  }
  0x12   :  { %113 = dma.done.wait [#allocation3], 256  }
  0x13   :  { %114 = vsyncadd [#allocation3], 4294967040  ;;  %v120_v0 = vmov 0   ;;  %v28_v1 = vld [vmem:[%s172_s1] sm:$0xf]  ;;  %v36_v4 = vlaneseq  ;;  %v27_v10 = vld [vmem:[#allocation2 + $0x8] sm:$0xff] }
  0x14   :  { %68 = vset.pattern.permute.xlu0 %v120_v0  ;;  %v121_v2 = vmov 839922192   ;;  %v26_v9 = vld [vmem:[#allocation2] sm:$0xff]  ;;  %s122_s25 = smov [#allocation5]  }
  0x15   :  { %31 = vperm.xlu0 %68, %v28_v1   ;;  %v34_v3 = vunpack.c.l.s4 %v121_v2  ;;  %v37_v6 = vshrl.u32 %v36_v4, 7  ;;  %s50_s0 = sshll.u32 %s122_s25, 4  ;;  %s51_s0 = int_to_ptr.vmem [resolvable:$true] %s50_s0 }
  0x16   :  { %s91_s26 = scalar_lea.vmem %s51_s0, 256  ;;  %p96_p9 = scmp.lt.s32.totalorder %s51_s0, %s51_s0 }
  0x17   :  { %v35_v5 = vunpack.c.0.s8 %v34_v3  ;;  %p92_p8 = scmp.ne.s32.totalorder %s51_s0, %s91_s26  ;;  %p97_p10 = scmp.lt.s32.totalorder %s91_s26, %s91_s26 }
  0x19   :  { %v38_v7 = vsub.s32 %v35_v5, %v37_v6  ;;  %p98_p11 = por %p97_p10, %p96_p9 }
  0x1b   :  { %p99_p12 = pnand %p98_p11, %p92_p8 }
  0x94   :  { %v32_v8 = vpop.permute.xlu0 %31 }
  0x95   :  { %v39_v11 = vrot.slane %v32_v8, %v38_v7 }
  0x97   :  { %v41_v12 = vmul.f32 %v39_v11, %v26_v9  ;;  %v42_v13 = vmul.f32 %v39_v11, %v27_v10 }
  0x99   :  { %43 = vst [vmem:[#allocation5] sm:$0xff] %v41_v12  ;;  %44 = vst [vmem:[#allocation5 + $0x8] sm:$0xff] %v42_v13 }
  0x9a   :  { %102 = shalt.err (!%p99_p12)
}
  0x9b   :  { %s103_s28 = scalar_lea.hbm %s173_s2, 256 }
  0x9c   :  { %p104_p13 = scmp.ne.s32.totalorder %s173_s2, %s103_s28  ;;  %p107_p0 = scmp.lt.u32.totalorder %s103_s28, %s173_s2 }
  0x9e   :  { %p109_p1 = pnand %p107_p0, %p104_p13 }
  0xa0   :  { %112 = shalt.err (!%p109_p1)
}
  0xa1   :  { %56 = dma.vmem_to_hbm [thread:$0]  %s51_s0, 256, %s173_s2, [#allocation4], %s118_s19, %s118_s19, %s119_s20  }
  0xa2   :  { %115 = dma.done.wait [#allocation4], 256  }
  0xa3   :  { %116 = vsyncadd [#allocation4], 4294967040 }
  0xa4   :  { %60 = vsyncpa [#allocation3], 1 }
  0xa5   :  { %61 = vsyncpa [#allocation4], 1 }

</bundles_post_ra>
